<compile_context>
chip_gen: v5e
topology: v5e:2x2
jax: 0.10.0
libtpu: 0.0.40
codegen_flags: <defaults>
</compile_context>

<pallas_src>
import functools
import math

import jax
import jax.numpy as jnp
from jax import lax
from jax.experimental import pallas as pl
from jax.experimental.pallas import tpu as pltpu

LN_EPS = 1e-5  # PyTorch nn.LayerNorm default


def _layer_norm_f32(v, g, b):
    mu = jnp.mean(v, axis=-1, keepdims=True)
    var = jnp.mean((v - mu) ** 2, axis=-1, keepdims=True)
    return (v - mu) * lax.rsqrt(var + LN_EPS) * g + b


def clip_encoder_kernel(*args, heads, capture_layer, use_mask, activation):
    n_in = 13 + int(use_mask)
    n_out = 1 + int(capture_layer is not None)
    in_refs = args[:n_in]
    out_refs = args[n_in:n_in + n_out]
    (x_scr,) = args[n_in + n_out:]

    (x_ref, ln1_g_ref, ln1_b_ref, wqkv_ref, bqkv_ref, wo_ref, bo_ref,
     ln2_g_ref, ln2_b_ref, w1_ref, b1_ref, w2_ref, b2_ref) = in_refs[:13]
    mask_ref = in_refs[13] if use_mask else None
    out_ref = out_refs[0]
    inter_ref = out_refs[1] if capture_layer is not None else None

    layer = pl.program_id(1)
    n_layers = pl.num_programs(1)

    # Residual stream lives in f32 VMEM scratch across the (inner) layer axis.
    @pl.when(layer == 0)
    def _():
        x_scr[...] = x_ref[0].astype(jnp.float32)

    x = x_scr[...]                                   # (T, D) f32 residual stream
    T, D = x.shape
    hd = D // heads
    scale = 1.0 / math.sqrt(hd)

    # MXU operands stay in the storage dtype; accumulation is f32.
    cdtype = wqkv_ref.dtype

    # ---- self-attention block (pre-LN, residual) -------------------------
    ln1_g = ln1_g_ref[0].astype(jnp.float32)
    ln1_b = ln1_b_ref[0].astype(jnp.float32)
    h = _layer_norm_f32(x, ln1_g, ln1_b).astype(cdtype)

    # Fused QKV projection: one (T,D)x(D,3D) MXU matmul with f32 accumulation.
    qkv = (jnp.dot(h, wqkv_ref[0], preferred_element_type=jnp.float32)
           + bqkv_ref[0].astype(jnp.float32))
    q = (qkv[:, :D] * scale).astype(cdtype)          # fold 1/sqrt(hd) into q
    k = qkv[:, D:2 * D].astype(cdtype)
    v = qkv[:, 2 * D:].astype(cdtype)

    mask = mask_ref[...].astype(jnp.float32) if use_mask else None

    # Per-head attention (static unroll). Head outputs are concatenated and go
    # through a single full-K output projection below.
    head_outs = []
    for hh in range(heads):
        sl = slice(hh * hd, (hh + 1) * hd)
        qh, kh, vh = q[:, sl], k[:, sl], v[:, sl]
        s = lax.dot_general(qh, kh, (((1,), (1,)), ((), ())),
                            preferred_element_type=jnp.float32)   # (T, T), scale in q
        if use_mask:
            s = s + mask
        s = s - jnp.max(s, axis=-1, keepdims=True)
        p = jnp.exp(s)
        p = p * pl.reciprocal(jnp.sum(p, axis=-1, keepdims=True), approx=True)
        head_outs.append(jnp.dot(p.astype(cdtype), vh,
                                 preferred_element_type=jnp.float32))
    o = jnp.concatenate(head_outs, axis=-1).astype(cdtype)          # (T, D)
    attn = (jnp.dot(o, wo_ref[0], preferred_element_type=jnp.float32)
            + bo_ref[0].astype(jnp.float32))
    x = x + attn

    # ---- MLP block (pre-LN, activation, residual) -------------------------
    ln2_g = ln2_g_ref[0].astype(jnp.float32)
    ln2_b = ln2_b_ref[0].astype(jnp.float32)
    h2 = _layer_norm_f32(x, ln2_g, ln2_b).astype(cdtype)
    m = (jnp.dot(h2, w1_ref[0], preferred_element_type=jnp.float32)
         + b1_ref[0].astype(jnp.float32))
    if activation == "quick_gelu":
        m = m * jax.nn.sigmoid(1.702 * m)
    else:  # exact (erf) gelu matching torch.nn.functional.gelu default
        m = 0.5 * m * (1.0 + lax.erf(m * (1.0 / math.sqrt(2.0))))
    m = (jnp.dot(m.astype(cdtype), w2_ref[0], preferred_element_type=jnp.float32)
         + b2_ref[0].astype(jnp.float32))
    x = x + m

    x_scr[...] = x

    if capture_layer is not None:
        @pl.when(layer == capture_layer)
        def _():
            inter_ref[0] = x.astype(inter_ref.dtype)

    @pl.when(layer == n_layers - 1)
    def _():
        out_ref[0] = x.astype(out_ref.dtype)


def _vmem_limit_bytes(fraction=0.75, fallback=64 * 1024 * 1024):
    try:
        return int(pltpu.get_tpu_info().vmem_capacity_bytes * fraction)
    except Exception:
        return fallback


def clip_encoder(x, layer_params, heads, mask=None, intermediate_output=None,
                 activation="quick_gelu"):
    """CLIPEncoder.forward. x: (B, T, D); weights pre-transposed to (in, out).

    Returns (final_x, intermediate) like the PyTorch module.
    """
    B, T, D = x.shape
    L = len(layer_params)
    if intermediate_output is not None and intermediate_output < 0:
        intermediate_output = L + intermediate_output
    capture = (intermediate_output
               if intermediate_output is not None and 0 <= intermediate_output < L
               else None)

    stack = lambda name: jnp.stack([p[name] for p in layer_params])
    # Host-side QKV fusion: one (D, 3D) weight / (1, 3D) bias per layer.
    wqkv = jnp.stack([jnp.concatenate([p["wq"], p["wk"], p["wv"]], axis=1)
                      for p in layer_params])
    bqkv = jnp.stack([jnp.concatenate([p["bq"], p["bk"], p["bv"]], axis=1)
                      for p in layer_params])
    weights = [stack("ln1_g"), stack("ln1_b"), wqkv, bqkv,
               stack("wo"), stack("bo"), stack("ln2_g"), stack("ln2_b"),
               stack("w1"), stack("b1"), stack("w2"), stack("b2")]

    # Per-layer weight blocks are indexed by the inner ("arbitrary") layer axis,
    # so the pipeline prefetches layer l+1 weights while layer l computes.
    def w_spec(arr):
        nd = arr.ndim
        return pl.BlockSpec((1,) + arr.shape[1:],
                            lambda b, l, _nd=nd: (l,) + (0,) * (_nd - 1))

    in_specs = [pl.BlockSpec((1, T, D), lambda b, l: (b, 0, 0))]
    in_specs += [w_spec(w) for w in weights]

    operands = [x] + weights
    use_mask = mask is not None
    if use_mask:
        mask2d = jnp.asarray(mask).reshape(T, T)
        operands.append(mask2d)
        in_specs.append(pl.BlockSpec((T, T), lambda b, l: (0, 0)))

    out_shapes = [jax.ShapeDtypeStruct((B, T, D), x.dtype)]
    out_specs = [pl.BlockSpec((1, T, D), lambda b, l: (b, 0, 0))]
    if capture is not None:
        out_shapes.append(jax.ShapeDtypeStruct((B, T, D), x.dtype))
        out_specs.append(pl.BlockSpec((1, T, D), lambda b, l: (b, 0, 0)))

    grid_spec = pltpu.PrefetchScalarGridSpec(
        num_scalar_prefetch=0,
        grid=(B, L),                 # batch outer (parallel), layers inner (carried)
        in_specs=in_specs,
        out_specs=out_specs,
        scratch_shapes=[pltpu.VMEM((T, D), jnp.float32)],
    )

    kernel = functools.partial(clip_encoder_kernel, heads=heads,
                               capture_layer=capture, use_mask=use_mask,
                               activation=activation)

    outs = pl.pallas_call(
        kernel,
        out_shape=tuple(out_shapes),
        grid_spec=grid_spec,
        compiler_params=pltpu.CompilerParams(
            dimension_semantics=("parallel", "arbitrary"),
            vmem_limit_bytes=_vmem_limit_bytes()),
    )(*operands)
    # TODO(synk): for B==1 on v7x, add a second parallel axis (sequence tiling) so
    # both TensorCores are used; not needed for this demo config.

    final = outs[0]
    intermediate = outs[1] if capture is not None else None
    return final, intermediate


# ------------------------- pure-JAX reference --------------------------------

def clip_layer_ref(x, p, heads, mask=None, activation="quick_gelu"):
    def ln(v, g, b):
        mu = jnp.mean(v, axis=-1, keepdims=True)
        var = jnp.mean((v - mu) ** 2, axis=-1, keepdims=True)
        return (v - mu) / jnp.sqrt(var + LN_EPS) * g + b

    B, T, D = x.shape
    hd = D // heads
    h = ln(x, p["ln1_g"], p["ln1_b"])
    q = h @ p["wq"] + p["bq"]
    k = h @ p["wk"] + p["bk"]
    v = h @ p["wv"] + p["bv"]
    qh = q.reshape(B, T, heads, hd).transpose(0, 2, 1, 3)
    kh = k.reshape(B, T, heads, hd).transpose(0, 2, 1, 3)
    vh = v.reshape(B, T, heads, hd).transpose(0, 2, 1, 3)
    s = jnp.einsum("bhtd,bhsd->bhts", qh, kh) / math.sqrt(hd)
    if mask is not None:
        s = s + mask
    a = jax.nn.softmax(s, axis=-1)
    o = jnp.einsum("bhts,bhsd->bhtd", a, vh).transpose(0, 2, 1, 3).reshape(B, T, D)
    x = x + (o @ p["wo"] + p["bo"])
    h2 = ln(x, p["ln2_g"], p["ln2_b"])
    m = h2 @ p["w1"] + p["b1"]
    if activation == "quick_gelu":
        m = m * jax.nn.sigmoid(1.702 * m)
    else:
        m = jax.nn.gelu(m, approximate=False)
    m = m @ p["w2"] + p["b2"]
    return x + m


def clip_encoder_ref(x, layer_params, heads, mask=None):
    for p in layer_params:
        x = clip_layer_ref(x, p, heads, mask)
    return x


def init_layer_params(key, D, I):
    ks = jax.random.split(key, 16)
    n = lambda k, s, sc: sc * jax.random.normal(k, s, dtype=jnp.float32)
    return {
        "ln1_g": 1.0 + n(ks[0], (1, D), 0.1), "ln1_b": n(ks[1], (1, D), 0.1),
        "wq": n(ks[2], (D, D), 0.05), "bq": n(ks[3], (1, D), 0.05),
        "wk": n(ks[4], (D, D), 0.05), "bk": n(ks[5], (1, D), 0.05),
        "wv": n(ks[6], (D, D), 0.05), "bv": n(ks[7], (1, D), 0.05),
        "wo": n(ks[8], (D, D), 0.05), "bo": n(ks[9], (1, D), 0.05),
        "ln2_g": 1.0 + n(ks[10], (1, D), 0.1), "ln2_b": n(ks[11], (1, D), 0.1),
        "w1": n(ks[12], (D, I), 0.05), "b1": n(ks[13], (1, I), 0.05),
        "w2": n(ks[14], (I, D), 0.05), "b2": n(ks[15], (1, D), 0.05),
    }


if __name__ == "__main__":
    # Small synthetic CLIP-encoder config.
    BATCH, SEQ, EMBED, HEADS, INTERMEDIATE, NUM_LAYERS = 2, 8, 32, 2, 128, 2

    key = jax.random.PRNGKey(0)
    keys = jax.random.split(key, NUM_LAYERS + 1)
    x = jax.random.normal(keys[0], (BATCH, SEQ, EMBED), dtype=jnp.float32)
    layer_params = [init_layer_params(k, EMBED, INTERMEDIATE) for k in keys[1:]]

    # 1) f32, no mask, no intermediate capture.
    out, inter = clip_encoder(x, layer_params, HEADS)
    out = jax.block_until_ready(out)
    ref = clip_encoder_ref(x, layer_params, HEADS)
    assert out.shape == (BATCH, SEQ, EMBED)
    assert inter is None
    err = jnp.max(jnp.abs(out - ref))
    assert jnp.allclose(out, ref, atol=2e-2, rtol=2e-2), f"f32 mismatch: {err}"

    # 2) intermediate_output = -1 -> output of the last layer (separate buffer,
    #    mirrors the PyTorch .clone()).
    out2, inter2 = clip_encoder(x, layer_params, HEADS, intermediate_output=-1)
    out2 = jax.block_until_ready(out2)
    assert inter2 is not None and jnp.allclose(inter2, out2, atol=1e-5, rtol=1e-5)

    # 3) additive causal mask (CLIP text tower path).
    causal = jnp.triu(jnp.full((SEQ, SEQ), -1e9, dtype=jnp.float32), k=1)
    out3, _ = clip_encoder(x, layer_params, HEADS, mask=causal)
    out3 = jax.block_until_ready(out3)
    ref3 = clip_encoder_ref(x, layer_params, HEADS, mask=causal)
    err3 = jnp.max(jnp.abs(out3 - ref3))
    assert jnp.allclose(out3, ref3, atol=2e-2, rtol=2e-2), f"masked mismatch: {err3}"

    # 4) bf16 storage / MXU path (f32 accumulation, f32 LN/softmax/residual).
    x_bf = x.astype(jnp.bfloat16)
    params_bf = [{k_: v_.astype(jnp.bfloat16) for k_, v_ in p.items()}
                 for p in layer_params]
    out4, _ = clip_encoder(x_bf, params_bf, HEADS)
    out4 = jax.block_until_ready(out4)
    err4 = jnp.max(jnp.abs(out4.astype(jnp.float32) - ref))
    assert err4 < 0.15, f"bf16 mismatch: {err4}"

    print("KERNEL_OK")
</pallas_src>

<mosaic_0001>
module attributes {stable_mosaic.version = 11 : i64} {
  func.func @clip_encoder_kernel(%arg0: i32, %arg1: i32, %arg2: memref<1x8x32xf32, #tpu.memory_space<vmem>>, %arg3: memref<1x1x32xf32, #tpu.memory_space<vmem>>, %arg4: memref<1x1x32xf32, #tpu.memory_space<vmem>>, %arg5: memref<1x32x96xf32, #tpu.memory_space<vmem>>, %arg6: memref<1x1x96xf32, #tpu.memory_space<vmem>>, %arg7: memref<1x32x32xf32, #tpu.memory_space<vmem>>, %arg8: memref<1x1x32xf32, #tpu.memory_space<vmem>>, %arg9: memref<1x1x32xf32, #tpu.memory_space<vmem>>, %arg10: memref<1x1x32xf32, #tpu.memory_space<vmem>>, %arg11: memref<1x32x128xf32, #tpu.memory_space<vmem>>, %arg12: memref<1x1x128xf32, #tpu.memory_space<vmem>>, %arg13: memref<1x128x32xf32, #tpu.memory_space<vmem>>, %arg14: memref<1x1x32xf32, #tpu.memory_space<vmem>>, %arg15: memref<1x8x32xf32, #tpu.memory_space<vmem>>, %arg16: memref<8x32xf32, #tpu.memory_space<vmem>>) attributes {dimension_semantics = [#tpu.dimension_semantics<parallel>, #tpu.dimension_semantics<arbitrary>], iteration_bounds = array<i64: 2, 2>, scalar_prefetch = 0 : i64, scratch_operands = 1 : i64, tpu.core_type = #tpu.core_type<tc>, window_params = [{transform_indices = @transform_0, window_bounds = array<i64: 1, 8, 32>}, {transform_indices = @transform_1, window_bounds = array<i64: 1, 1, 32>}, {transform_indices = @transform_2, window_bounds = array<i64: 1, 1, 32>}, {transform_indices = @transform_3, window_bounds = array<i64: 1, 32, 96>}, {transform_indices = @transform_4, window_bounds = array<i64: 1, 1, 96>}, {transform_indices = @transform_5, window_bounds = array<i64: 1, 32, 32>}, {transform_indices = @transform_6, window_bounds = array<i64: 1, 1, 32>}, {transform_indices = @transform_7, window_bounds = array<i64: 1, 1, 32>}, {transform_indices = @transform_8, window_bounds = array<i64: 1, 1, 32>}, {transform_indices = @transform_9, window_bounds = array<i64: 1, 32, 128>}, {transform_indices = @transform_10, window_bounds = array<i64: 1, 1, 128>}, {transform_indices = @transform_11, window_bounds = array<i64: 1, 128, 32>}, {transform_indices = @transform_12, window_bounds = array<i64: 1, 1, 32>}, {transform_indices = @transform_13, window_bounds = array<i64: 1, 8, 32>}]} {
    %c0_i32 = arith.constant 0 : i32
    %0 = arith.cmpi eq, %arg1, %c0_i32 : i32
    %1 = arith.extui %0 : i1 to i32
    %c0_i32_0 = arith.constant 0 : i32
    %2 = arith.cmpi ne, %1, %c0_i32_0 : i32
    scf.if %2 {
      %c0_65 = arith.constant 0 : index
      %c0_66 = arith.constant 0 : index
      %c0_67 = arith.constant 0 : index
      %134 = vector.load %arg2[%c0_65, %c0_66, %c0_67] : memref<1x8x32xf32, #tpu.memory_space<vmem>>, vector<1x8x32xf32>
      %135 = vector.shape_cast %134 : vector<1x8x32xf32> to vector<8x32xf32>
      %c0_68 = arith.constant 0 : index
      %c0_69 = arith.constant 0 : index
      %136 = vector.load %arg16[%c0_68, %c0_69] : memref<8x32xf32, #tpu.memory_space<vmem>>, vector<8x32xf32>
      tpu.vector_store %arg16[%c0_68, %c0_69], %135 {strides = array<i32>} : memref<8x32xf32, #tpu.memory_space<vmem>>, vector<8x32xf32>,
    } else {
    }
    %c0 = arith.constant 0 : index
    %c0_1 = arith.constant 0 : index
    %3 = vector.load %arg16[%c0, %c0_1] : memref<8x32xf32, #tpu.memory_space<vmem>>, vector<8x32xf32>
    %c0_2 = arith.constant 0 : index
    %c0_3 = arith.constant 0 : index
    %c0_4 = arith.constant 0 : index
    %4 = vector.load %arg3[%c0_2, %c0_3, %c0_4] : memref<1x1x32xf32, #tpu.memory_space<vmem>>, vector<1x1x32xf32>
    %5 = vector.shape_cast %4 : vector<1x1x32xf32> to vector<1x32xf32>
    %c0_5 = arith.constant 0 : index
    %c0_6 = arith.constant 0 : index
    %c0_7 = arith.constant 0 : index
    %6 = vector.load %arg4[%c0_5, %c0_6, %c0_7] : memref<1x1x32xf32, #tpu.memory_space<vmem>>, vector<1x1x32xf32>
    %7 = vector.shape_cast %6 : vector<1x1x32xf32> to vector<1x32xf32>
    %cst = arith.constant dense<0.000000e+00> : vector<8xf32>
    %8 = vector.multi_reduction <add>, %3, %cst [1] : vector<8x32xf32> to vector<8xf32>
    %9 = vector.shape_cast %8 : vector<8xf32> to vector<8x1xf32>
    %cst_8 = arith.constant 3.200000e+01 : f32
    %10 = vector.broadcast %cst_8 : f32 to vector<8x1xf32>
    %11 = arith.divf %9, %10 : vector<8x1xf32>
    %12 = vector.broadcast %11 : vector<8x1xf32> to vector<8x32xf32>
    %13 = arith.subf %3, %12 : vector<8x32xf32>
    %14 = arith.mulf %13, %13 : vector<8x32xf32>
    %cst_9 = arith.constant dense<0.000000e+00> : vector<8xf32>
    %15 = vector.multi_reduction <add>, %14, %cst_9 [1] : vector<8x32xf32> to vector<8xf32>
    %16 = vector.shape_cast %15 : vector<8xf32> to vector<8x1xf32>
    %cst_10 = arith.constant 3.200000e+01 : f32
    %17 = vector.broadcast %cst_10 : f32 to vector<8x1xf32>
    %18 = arith.divf %16, %17 : vector<8x1xf32>
    %19 = vector.broadcast %11 : vector<8x1xf32> to vector<8x32xf32>
    %20 = arith.subf %3, %19 : vector<8x32xf32>
    %cst_11 = arith.constant 9.99999974E-6 : f32
    %21 = vector.broadcast %cst_11 : f32 to vector<8x1xf32>
    %22 = arith.addf %18, %21 : vector<8x1xf32>
    %23 = math.rsqrt %22 : vector<8x1xf32>
    %24 = vector.broadcast %23 : vector<8x1xf32> to vector<8x32xf32>
    %25 = arith.mulf %20, %24 : vector<8x32xf32>
    %26 = vector.broadcast %5 : vector<1x32xf32> to vector<8x32xf32>
    %27 = arith.mulf %25, %26 : vector<8x32xf32>
    %28 = vector.broadcast %7 : vector<1x32xf32> to vector<8x32xf32>
    %29 = arith.addf %27, %28 : vector<8x32xf32>
    %c0_12 = arith.constant 0 : index
    %c0_13 = arith.constant 0 : index
    %c0_14 = arith.constant 0 : index
    %30 = vector.load %arg5[%c0_12, %c0_13, %c0_14] : memref<1x32x96xf32, #tpu.memory_space<vmem>>, vector<1x32x96xf32>
    %31 = vector.shape_cast %30 : vector<1x32x96xf32> to vector<32x96xf32>
    %cst_15 = arith.constant dense<0.000000e+00> : vector<8x96xf32>
    %32 = tpu.matmul %29, %31, %cst_15 {dimension_numbers = #tpu.dot_dimension_numbers<[1], [0], [0], [1], [0, 0, 1, 1], [], []>} : vector<8x32xf32>, vector<32x96xf32>, vector<8x96xf32> -> vector<8x96xf32>
    %c0_16 = arith.constant 0 : index
    %c0_17 = arith.constant 0 : index
    %c0_18 = arith.constant 0 : index
    %33 = vector.load %arg6[%c0_16, %c0_17, %c0_18] : memref<1x1x96xf32, #tpu.memory_space<vmem>>, vector<1x1x96xf32>
    %34 = vector.shape_cast %33 : vector<1x1x96xf32> to vector<1x96xf32>
    %35 = vector.broadcast %34 : vector<1x96xf32> to vector<8x96xf32>
    %36 = arith.addf %32, %35 : vector<8x96xf32>
    %37 = vector.extract_strided_slice %36 {offsets = [0, 0], sizes = [8, 32], strides = [1, 1]} : vector<8x96xf32> to vector<8x32xf32>
    %cst_19 = arith.constant 2.500000e-01 : f32
    %38 = vector.broadcast %cst_19 : f32 to vector<8x32xf32>
    %39 = arith.mulf %37, %38 : vector<8x32xf32>
    %40 = vector.extract_strided_slice %36 {offsets = [0, 32], sizes = [8, 32], strides = [1, 1]} : vector<8x96xf32> to vector<8x32xf32>
    %41 = vector.extract_strided_slice %36 {offsets = [0, 64], sizes = [8, 32], strides = [1, 1]} : vector<8x96xf32> to vector<8x32xf32>
    %42 = vector.extract_strided_slice %39 {offsets = [0, 0], sizes = [8, 16], strides = [1, 1]} : vector<8x32xf32> to vector<8x16xf32>
    %43 = vector.extract_strided_slice %40 {offsets = [0, 0], sizes = [8, 16], strides = [1, 1]} : vector<8x32xf32> to vector<8x16xf32>
    %44 = vector.extract_strided_slice %41 {offsets = [0, 0], sizes = [8, 16], strides = [1, 1]} : vector<8x32xf32> to vector<8x16xf32>
    %cst_20 = arith.constant dense<0.000000e+00> : vector<8x8xf32>
    %45 = tpu.matmul %42, %43, %cst_20 {dimension_numbers = #tpu.dot_dimension_numbers<[1], [1], [0], [0], [0, 0, 1, 0], [], []>} : vector<8x16xf32>, vector<8x16xf32>, vector<8x8xf32> -> vector<8x8xf32>
    %cst_21 = arith.constant dense<0xFF800000> : vector<8xf32>
    %46 = vector.multi_reduction <maximumf>, %45, %cst_21 [1] : vector<8x8xf32> to vector<8xf32>
    %47 = vector.shape_cast %46 : vector<8xf32> to vector<8x1xf32>
    %48 = vector.broadcast %47 : vector<8x1xf32> to vector<8x8xf32>
    %49 = arith.subf %45, %48 : vector<8x8xf32>
    %50 = math.exp %49 : vector<8x8xf32>
    %cst_22 = arith.constant dense<0.000000e+00> : vector<8xf32>
    %51 = vector.multi_reduction <add>, %50, %cst_22 [1] : vector<8x8xf32> to vector<8xf32>
    %52 = vector.shape_cast %51 : vector<8xf32> to vector<8x1xf32>
    %53 = tpu.reciprocal %52 {approx = true} : vector<8x1xf32> -> vector<8x1xf32>
    %54 = vector.broadcast %53 : vector<8x1xf32> to vector<8x8xf32>
    %55 = arith.mulf %50, %54 : vector<8x8xf32>
    %cst_23 = arith.constant dense<0.000000e+00> : vector<8x16xf32>
    %56 = tpu.matmul %55, %44, %cst_23 {dimension_numbers = #tpu.dot_dimension_numbers<[1], [0], [0], [1], [0, 0, 1, 1], [], []>} : vector<8x8xf32>, vector<8x16xf32>, vector<8x16xf32> -> vector<8x16xf32>
    %57 = vector.extract_strided_slice %39 {offsets = [0, 16], sizes = [8, 16], strides = [1, 1]} : vector<8x32xf32> to vector<8x16xf32>
    %58 = vector.extract_strided_slice %40 {offsets = [0, 16], sizes = [8, 16], strides = [1, 1]} : vector<8x32xf32> to vector<8x16xf32>
    %59 = vector.extract_strided_slice %41 {offsets = [0, 16], sizes = [8, 16], strides = [1, 1]} : vector<8x32xf32> to vector<8x16xf32>
    %cst_24 = arith.constant dense<0.000000e+00> : vector<8x8xf32>
    %60 = tpu.matmul %57, %58, %cst_24 {dimension_numbers = #tpu.dot_dimension_numbers<[1], [1], [0], [0], [0, 0, 1, 0], [], []>} : vector<8x16xf32>, vector<8x16xf32>, vector<8x8xf32> -> vector<8x8xf32>
    %cst_25 = arith.constant dense<0xFF800000> : vector<8xf32>
    %61 = vector.multi_reduction <maximumf>, %60, %cst_25 [1] : vector<8x8xf32> to vector<8xf32>
    %62 = vector.shape_cast %61 : vector<8xf32> to vector<8x1xf32>
    %63 = vector.broadcast %62 : vector<8x1xf32> to vector<8x8xf32>
    %64 = arith.subf %60, %63 : vector<8x8xf32>
    %65 = math.exp %64 : vector<8x8xf32>
    %cst_26 = arith.constant dense<0.000000e+00> : vector<8xf32>
    %66 = vector.multi_reduction <add>, %65, %cst_26 [1] : vector<8x8xf32> to vector<8xf32>
    %67 = vector.shape_cast %66 : vector<8xf32> to vector<8x1xf32>
    %68 = tpu.reciprocal %67 {approx = true} : vector<8x1xf32> -> vector<8x1xf32>
    %69 = vector.broadcast %68 : vector<8x1xf32> to vector<8x8xf32>
    %70 = arith.mulf %65, %69 : vector<8x8xf32>
    %cst_27 = arith.constant dense<0.000000e+00> : vector<8x16xf32>
    %71 = tpu.matmul %70, %59, %cst_27 {dimension_numbers = #tpu.dot_dimension_numbers<[1], [0], [0], [1], [0, 0, 1, 1], [], []>} : vector<8x8xf32>, vector<8x16xf32>, vector<8x16xf32> -> vector<8x16xf32>
    %72 = tpu.concatenate %56, %71 in 1 : vector<8x16xf32>, vector<8x16xf32> -> vector<8x32xf32>
    %c0_28 = arith.constant 0 : index
    %c0_29 = arith.constant 0 : index
    %c0_30 = arith.constant 0 : index
    %73 = vector.load %arg7[%c0_28, %c0_29, %c0_30] : memref<1x32x32xf32, #tpu.memory_space<vmem>>, vector<1x32x32xf32>
    %74 = vector.shape_cast %73 : vector<1x32x32xf32> to vector<32x32xf32>
    %cst_31 = arith.constant dense<0.000000e+00> : vector<8x32xf32>
    %75 = tpu.matmul %72, %74, %cst_31 {dimension_numbers = #tpu.dot_dimension_numbers<[1], [0], [0], [1], [0, 0, 1, 1], [], []>} : vector<8x32xf32>, vector<32x32xf32>, vector<8x32xf32> -> vector<8x32xf32>
    %c0_32 = arith.constant 0 : index
    %c0_33 = arith.constant 0 : index
    %c0_34 = arith.constant 0 : index
    %76 = vector.load %arg8[%c0_32, %c0_33, %c0_34] : memref<1x1x32xf32, #tpu.memory_space<vmem>>, vector<1x1x32xf32>
    %77 = vector.shape_cast %76 : vector<1x1x32xf32> to vector<1x32xf32>
    %78 = vector.broadcast %77 : vector<1x32xf32> to vector<8x32xf32>
    %79 = arith.addf %75, %78 : vector<8x32xf32>
    %80 = arith.addf %3, %79 : vector<8x32xf32>
    %c0_35 = arith.constant 0 : index
    %c0_36 = arith.constant 0 : index
    %c0_37 = arith.constant 0 : index
    %81 = vector.load %arg9[%c0_35, %c0_36, %c0_37] : memref<1x1x32xf32, #tpu.memory_space<vmem>>, vector<1x1x32xf32>
    %82 = vector.shape_cast %81 : vector<1x1x32xf32> to vector<1x32xf32>
    %c0_38 = arith.constant 0 : index
    %c0_39 = arith.constant 0 : index
    %c0_40 = arith.constant 0 : index
    %83 = vector.load %arg10[%c0_38, %c0_39, %c0_40] : memref<1x1x32xf32, #tpu.memory_space<vmem>>, vector<1x1x32xf32>
    %84 = vector.shape_cast %83 : vector<1x1x32xf32> to vector<1x32xf32>
    %cst_41 = arith.constant dense<0.000000e+00> : vector<8xf32>
    %85 = vector.multi_reduction <add>, %80, %cst_41 [1] : vector<8x32xf32> to vector<8xf32>
    %86 = vector.shape_cast %85 : vector<8xf32> to vector<8x1xf32>
    %cst_42 = arith.constant 3.200000e+01 : f32
    %87 = vector.broadcast %cst_42 : f32 to vector<8x1xf32>
    %88 = arith.divf %86, %87 : vector<8x1xf32>
    %89 = vector.broadcast %88 : vector<8x1xf32> to vector<8x32xf32>
    %90 = arith.subf %80, %89 : vector<8x32xf32>
    %91 = arith.mulf %90, %90 : vector<8x32xf32>
    %cst_43 = arith.constant dense<0.000000e+00> : vector<8xf32>
    %92 = vector.multi_reduction <add>, %91, %cst_43 [1] : vector<8x32xf32> to vector<8xf32>
    %93 = vector.shape_cast %92 : vector<8xf32> to vector<8x1xf32>
    %cst_44 = arith.constant 3.200000e+01 : f32
    %94 = vector.broadcast %cst_44 : f32 to vector<8x1xf32>
    %95 = arith.divf %93, %94 : vector<8x1xf32>
    %96 = vector.broadcast %88 : vector<8x1xf32> to vector<8x32xf32>
    %97 = arith.subf %80, %96 : vector<8x32xf32>
    %cst_45 = arith.constant 9.99999974E-6 : f32
    %98 = vector.broadcast %cst_45 : f32 to vector<8x1xf32>
    %99 = arith.addf %95, %98 : vector<8x1xf32>
    %100 = math.rsqrt %99 : vector<8x1xf32>
    %101 = vector.broadcast %100 : vector<8x1xf32> to vector<8x32xf32>
    %102 = arith.mulf %97, %101 : vector<8x32xf32>
    %103 = vector.broadcast %82 : vector<1x32xf32> to vector<8x32xf32>
    %104 = arith.mulf %102, %103 : vector<8x32xf32>
    %105 = vector.broadcast %84 : vector<1x32xf32> to vector<8x32xf32>
    %106 = arith.addf %104, %105 : vector<8x32xf32>
    %c0_46 = arith.constant 0 : index
    %c0_47 = arith.constant 0 : index
    %c0_48 = arith.constant 0 : index
    %107 = vector.load %arg11[%c0_46, %c0_47, %c0_48] : memref<1x32x128xf32, #tpu.memory_space<vmem>>, vector<1x32x128xf32>
    %108 = vector.shape_cast %107 : vector<1x32x128xf32> to vector<32x128xf32>
    %cst_49 = arith.constant dense<0.000000e+00> : vector<8x128xf32>
    %109 = tpu.matmul %106, %108, %cst_49 {dimension_numbers = #tpu.dot_dimension_numbers<[1], [0], [0], [1], [0, 0, 1, 1], [], []>} : vector<8x32xf32>, vector<32x128xf32>, vector<8x128xf32> -> vector<8x128xf32>
    %c0_50 = arith.constant 0 : index
    %c0_51 = arith.constant 0 : index
    %c0_52 = arith.constant 0 : index
    %110 = vector.load %arg12[%c0_50, %c0_51, %c0_52] : memref<1x1x128xf32, #tpu.memory_space<vmem>>, vector<1x1x128xf32>
    %111 = vector.shape_cast %110 : vector<1x1x128xf32> to vector<1x128xf32>
    %112 = vector.broadcast %111 : vector<1x128xf32> to vector<8x128xf32>
    %113 = arith.addf %109, %112 : vector<8x128xf32>
    %cst_53 = arith.constant 1.702000e+00 : f32
    %114 = vector.broadcast %cst_53 : f32 to vector<8x128xf32>
    %115 = arith.mulf %114, %113 : vector<8x128xf32>
    %116 = arith.negf %115 : vector<8x128xf32>
    %117 = math.exp %116 : vector<8x128xf32>
    %cst_54 = arith.constant 1.000000e+00 : f32
    %118 = vector.broadcast %cst_54 : f32 to vector<8x128xf32>
    %119 = arith.addf %118, %117 : vector<8x128xf32>
    %120 = arith.divf %118, %119 : vector<8x128xf32>
    %121 = arith.mulf %113, %120 : vector<8x128xf32>
    %c0_55 = arith.constant 0 : index
    %c0_56 = arith.constant 0 : index
    %c0_57 = arith.constant 0 : index
    %122 = vector.load %arg13[%c0_55, %c0_56, %c0_57] : memref<1x128x32xf32, #tpu.memory_space<vmem>>, vector<1x128x32xf32>
    %123 = vector.shape_cast %122 : vector<1x128x32xf32> to vector<128x32xf32>
    %cst_58 = arith.constant dense<0.000000e+00> : vector<8x32xf32>
    %124 = tpu.matmul %121, %123, %cst_58 {dimension_numbers = #tpu.dot_dimension_numbers<[1], [0], [0], [1], [0, 0, 1, 1], [], []>} : vector<8x128xf32>, vector<128x32xf32>, vector<8x32xf32> -> vector<8x32xf32>
    %c0_59 = arith.constant 0 : index
    %c0_60 = arith.constant 0 : index
    %c0_61 = arith.constant 0 : index
    %125 = vector.load %arg14[%c0_59, %c0_60, %c0_61] : memref<1x1x32xf32, #tpu.memory_space<vmem>>, vector<1x1x32xf32>
    %126 = vector.shape_cast %125 : vector<1x1x32xf32> to vector<1x32xf32>
    %127 = vector.broadcast %126 : vector<1x32xf32> to vector<8x32xf32>
    %128 = arith.addf %124, %127 : vector<8x32xf32>
    %129 = arith.addf %80, %128 : vector<8x32xf32>
    %c0_62 = arith.constant 0 : index
    %c0_63 = arith.constant 0 : index
    %130 = vector.load %arg16[%c0_62, %c0_63] : memref<8x32xf32, #tpu.memory_space<vmem>>, vector<8x32xf32>
    tpu.vector_store %arg16[%c0_62, %c0_63], %129 {strides = array<i32>} : memref<8x32xf32, #tpu.memory_space<vmem>>, vector<8x32xf32>,
    %c1_i32 = arith.constant 1 : i32
    %131 = arith.cmpi eq, %arg1, %c1_i32 : i32
    %132 = arith.extui %131 : i1 to i32
    %c0_i32_64 = arith.constant 0 : i32
    %133 = arith.cmpi ne, %132, %c0_i32_64 : i32
    scf.if %133 {
      %c0_65 = arith.constant 0 : index
      %c0_66 = arith.constant 0 : index
      %c0_67 = arith.constant 0 : index
      %134 = vector.load %arg15[%c0_65, %c0_66, %c0_67] : memref<1x8x32xf32, #tpu.memory_space<vmem>>, vector<1x8x32xf32>
      %135 = vector.shape_cast %134 : vector<1x8x32xf32> to vector<8x32xf32>
      %136 = vector.shape_cast %129 : vector<8x32xf32> to vector<1x8x32xf32>
      tpu.vector_store %arg15[%c0_65, %c0_66, %c0_67], %136 {strides = array<i32>} : memref<1x8x32xf32, #tpu.memory_space<vmem>>, vector<1x8x32xf32>,
    } else {
    }
    return
  }
  func.func @transform_0(%arg0: i32, %arg1: i32) -> (i32, i32, i32) {
    %c0_i32 = arith.constant 0 : i32
    %c0_i32_0 = arith.constant 0 : i32
    %c0_i32_1 = arith.constant 0 : i32
    return %arg0, %c0_i32, %c0_i32_0 : i32, i32, i32
  }
  func.func @transform_1(%arg0: i32, %arg1: i32) -> (i32, i32, i32) {
    %c0_i32 = arith.constant 0 : i32
    %c0_i32_0 = arith.constant 0 : i32
    %c0_i32_1 = arith.constant 0 : i32
    return %arg1, %c0_i32, %c0_i32_0 : i32, i32, i32
  }
  func.func @transform_2(%arg0: i32, %arg1: i32) -> (i32, i32, i32) {
    %c0_i32 = arith.constant 0 : i32
    %c0_i32_0 = arith.constant 0 : i32
    %c0_i32_1 = arith.constant 0 : i32
    return %arg1, %c0_i32, %c0_i32_0 : i32, i32, i32
  }
  func.func @transform_3(%arg0: i32, %arg1: i32) -> (i32, i32, i32) {
    %c0_i32 = arith.constant 0 : i32
    %c0_i32_0 = arith.constant 0 : i32
    %c0_i32_1 = arith.constant 0 : i32
    return %arg1, %c0_i32, %c0_i32_0 : i32, i32, i32
  }
  func.func @transform_4(%arg0: i32, %arg1: i32) -> (i32, i32, i32) {
    %c0_i32 = arith.constant 0 : i32
    %c0_i32_0 = arith.constant 0 : i32
    %c0_i32_1 = arith.constant 0 : i32
    return %arg1, %c0_i32, %c0_i32_0 : i32, i32, i32
  }
  func.func @transform_5(%arg0: i32, %arg1: i32) -> (i32, i32, i32) {
    %c0_i32 = arith.constant 0 : i32
    %c0_i32_0 = arith.constant 0 : i32
    %c0_i32_1 = arith.constant 0 : i32
    return %arg1, %c0_i32, %c0_i32_0 : i32, i32, i32
  }
  func.func @transform_6(%arg0: i32, %arg1: i32) -> (i32, i32, i32) {
    %c0_i32 = arith.constant 0 : i32
    %c0_i32_0 = arith.constant 0 : i32
    %c0_i32_1 = arith.constant 0 : i32
    return %arg1, %c0_i32, %c0_i32_0 : i32, i32, i32
  }
  func.func @transform_7(%arg0: i32, %arg1: i32) -> (i32, i32, i32) {
    %c0_i32 = arith.constant 0 : i32
    %c0_i32_0 = arith.constant 0 : i32
    %c0_i32_1 = arith.constant 0 : i32
    return %arg1, %c0_i32, %c0_i32_0 : i32, i32, i32
  }
  func.func @transform_8(%arg0: i32, %arg1: i32) -> (i32, i32, i32) {
    %c0_i32 = arith.constant 0 : i32
    %c0_i32_0 = arith.constant 0 : i32
    %c0_i32_1 = arith.constant 0 : i32
    return %arg1, %c0_i32, %c0_i32_0 : i32, i32, i32
  }
  func.func @transform_9(%arg0: i32, %arg1: i32) -> (i32, i32, i32) {
    %c0_i32 = arith.constant 0 : i32
    %c0_i32_0 = arith.constant 0 : i32
    %c0_i32_1 = arith.constant 0 : i32
    return %arg1, %c0_i32, %c0_i32_0 : i32, i32, i32
  }
  func.func @transform_10(%arg0: i32, %arg1: i32) -> (i32, i32, i32) {
    %c0_i32 = arith.constant 0 : i32
    %c0_i32_0 = arith.constant 0 : i32
    %c0_i32_1 = arith.constant 0 : i32
    return %arg1, %c0_i32, %c0_i32_0 : i32, i32, i32
  }
  func.func @transform_11(%arg0: i32, %arg1: i32) -> (i32, i32, i32) {
    %c0_i32 = arith.constant 0 : i32
    %c0_i32_0 = arith.constant 0 : i32
    %c0_i32_1 = arith.constant 0 : i32
    return %arg1, %c0_i32, %c0_i32_0 : i32, i32, i32
  }
  func.func @transform_12(%arg0: i32, %arg1: i32) -> (i32, i32, i32) {
    %c0_i32 = arith.constant 0 : i32
    %c0_i32_0 = arith.constant 0 : i32
    %c0_i32_1 = arith.constant 0 : i32
    return %arg1, %c0_i32, %c0_i32_0 : i32, i32, i32
  }
  func.func @transform_13(%arg0: i32, %arg1: i32) -> (i32, i32, i32) {
    %c0_i32 = arith.constant 0 : i32
    %c0_i32_0 = arith.constant 0 : i32
    %c0_i32_1 = arith.constant 0 : i32
    return %arg0, %c0_i32, %c0_i32_0 : i32, i32, i32
  }
}

</mosaic_0001>

<bundles_post_ra>
// kernel: tpu_custom_call.1
= control target key start
LH: loop header
LB: loop body
LE: loop exit
PB: predicated region body
PF: predicated region fallthrough
CT: control target
= control target key end

     0   :  { %s1830_s0 = inlined_call_operand.vmem [shape: f32[2,8,32], index: 0, kind: input, shape index: {}]   ;;  %s1831_s1 = inlined_call_operand.vmem [shape: f32[2,1,32], index: 1, kind: input, shape index: {}]   ;;  %s1832_s2 = inlined_call_operand.vmem [shape: f32[2,1,32], index: 2, kind: input, shape index: {}]   ;;  %s1833_s3 = inlined_call_operand.vmem [shape: f32[2,32,96], index: 3, kind: input, shape index: {}]   ;;  %s1834_s4 = inlined_call_operand.vmem [shape: f32[2,1,96], index: 4, kind: input, shape index: {}]   ;;  %s1835_s5 = inlined_call_operand.vmem [shape: f32[2,32,32], index: 5, kind: input, shape index: {}]   ;;  %s1836_s6 = inlined_call_operand.vmem [shape: f32[2,1,32], index: 6, kind: input, shape index: {}]   ;;  %s1837_s7 = inlined_call_operand.vmem [shape: f32[2,1,32], index: 7, kind: input, shape index: {}]   ;;  %s1838_s8 = inlined_call_operand.vmem [shape: f32[2,1,32], index: 8, kind: input, shape index: {}]   ;;  %s1839_s9 = inlined_call_operand.vmem [shape: f32[2,32,128], index: 9, kind: input, shape index: {}]   ;;  %s1840_s10 = inlined_call_operand.vmem [shape: f32[2,1,128], index: 10, kind: input, shape index: {}]   ;;  %s1841_s11 = inlined_call_operand.vmem [shape: f32[2,128,32], index: 11, kind: input, shape index: {}]   ;;  %s1842_s12 = inlined_call_operand.vmem [shape: f32[2,1,32], index: 12, kind: input, shape index: {}]   ;;  %s1843_s13 = inlined_call_operand.hbm [shape: f32[2,8,32], index: 13, kind: output, shape index: {}]  }
   0x1   :  { %1859 = sst [smem:[#allocation19_spill]] %s1830_s0 }
   0x2   :  { %1860 = sst [smem:[#allocation20_spill]] %s1832_s2 }
   0x3   :  { %1861 = sst [smem:[#allocation21_spill]] %s1833_s3 }
   0x4   :  { %1862 = sst [smem:[#allocation22_spill]] %s1835_s5 }
   0x5   :  { %1863 = sst [smem:[#allocation23_spill]] %s1843_s13 }
   0x6   :  { %18 = vsyncpa [#allocation4], 0 }
   0x7   :  { %20 = vsyncpa [#allocation4 + $0x1], 0  ;;  %s1538_s25 = smov 0   ;;  %s1540_s26 = smov 0  }
   0x8   :  { %s1542_s27 = smov 0   ;;  %s1544_s28 = smov 0  }
   0x9   :  { %s1546_s29 = smov 0   ;;  %s1548_s30 = smov 0  }
   0xa   :  { %s1550_s14 = smov 0   ;;  %s1552_s15 = smov 0  }
   0xb LB: > { %1864 = sst [smem:[#allocation6_spill]] %s1431_s25  ;;  %s1226_s16 = sadd.s32 4294967295, %s1459_s15   ;;  %s1459_s15 = sphi %s1552_s15, %s26_s15   ;;  %s1455_s14 = sphi %s1550_s14, %s1905_s14   ;;  %s1451_s30 = sphi %s1548_s30, %s1904_s30   ;;  %s1447_s29 = sphi %s1546_s29, %s1903_s29   ;;  %s1443_s28 = sphi %s1544_s28, %s1902_s28   ;;  %s1439_s27 = sphi %s1542_s27, %s1901_s27   ;;  %s1435_s26 = sphi %s1540_s26, %s1900_s26   ;;  %s1431_s25 = sphi %s1538_s25, %s1899_s25  }
   0xc   : > { %1865 = sst [smem:[#allocation7_spill]] %s1435_s26  ;;  %s1227_s17 = sadd.s32 4294967294, %s1459_s15  }
   0xd   : > { %1866 = sst [smem:[#allocation8_spill]] %s1439_s27  ;;  %s35_s18 = sadd.s32 1, %s1451_s30 }
   0xe   : > { %1867 = sst [smem:[#allocation9_spill]] %s1443_s28  ;;  %p36_p0 = scmp.ge.s32.totalorder %s35_s18, 2 }
   0xf   : > { %1868 = sst [smem:[#allocation10_spill]] %s1447_s29  ;;  %s38_s19 = sadd.s32 1, %s1455_s14 }
  0x10   : > { %1869 = sst [smem:[#allocation11_spill]] %s1451_s30  ;;  %p393_p1 = scmp.ne.s32.totalorder %s1439_s27, %s1435_s26 }
  0x11   : > { %1870 = sst [smem:[#allocation12_spill]] %s1455_s14  ;;  %p394_p2 = scmp.eq.s32.totalorder %s1226_s16, 3 }
  0x12   : > { %1871 = sst [smem:[#allocation13_spill]] %s1459_s15  ;;  %s1907_s18 = smov (%p36_p0, %s35_s18), 0 }
  0x13   : > { %1872 = sst [smem:[#allocation14_spill]] %s1907_s18  ;;  %s1909_s19 = smov (!%p36_p0, %s38_s19), %s1455_s14 }
  0x14   : > { %p1587_p3 = por %p394_p2, %p393_p1  ;;  %p399_p4 = scmp.ne.s32.totalorder %s1435_s26, %s1431_s25 }
  0x15   : > { %p40_p5 = scmp.ge.s32.totalorder %s1909_s19, 2  ;;  %p400_p6 = scmp.eq.s32.totalorder %s1227_s17, 3 }
  0x16   : > { %s1873_s20 = scalar_select %p1587_p3, 1, 0 }
  0x17   : > { %p1230_p7 = scmp.ge.s32.totalorder %s1459_s15, 1  ;;  %p505_p8 = scmp.lt.s32.totalorder %s1459_s15, 5 }
  0x18   : > { %1874 = sst [smem:[#allocation15_spill]] %s1873_s20  ;;  %s1911_s19 = smov (%p40_p5, %s1909_s19), 0 }
  0x19   : > { %1875 = sst [smem:[#allocation16_spill]] %s1911_s19  ;;  %p1597_p9 = por %p400_p6, %p399_p4 }
  0x1a   : > { %p506_p10 = pnand %p1230_p7, %p505_p8  ;;  %s380_s22 = ssub.s32 %s1455_s14, %s1911_s19 }
  0x1b   : > { %s1876_s21 = scalar_select %p1597_p9, 1, 0 }
  0x1c   : > { %s383_s23 = sadd.s32 1, %s1439_s27  ;;  %p381_p11 = scmp.eq.s32.totalorder %s380_s22, 0 }
  0x1d   : > { %1877 = sst [smem:[#allocation17_spill]] %s1876_s21  ;;  %509 = sbr.rel (%p506_p10) target bundleno = 1961 (0x7a9), region = 72 }
  0x1e   : > { %s1605_s24 = scalar_select %p381_p11, %s1439_s27, %s383_s23  }
  0x1f   : > { %s1846_s16 = sand.u32 (!%p506_p10), 1, %s1435_s26   ;;  %p592_p12 = scmp.lt.s32.totalorder (!%p506_p10), %s1447_s29, 1 }
  0x20   : > { %1878 = sst [smem:[#allocation18_spill]] %s1605_s24  ;;  %s1611_s17 = sshll.u32 (!%p506_p10), %s1846_s16, 3 }
  0x21   : > { %p596_p13 = scmp.lt.s32.totalorder (!%p506_p10), %s1443_s28, 1  ;;  %s1879_s0 = sld [smem:[#allocation19_spill]] (!%p506_p10) }
  0x22   : > { %s593_s18 = scalar_select %p592_p12, %s1447_s29, 1 }
  0x23   : > { %s1616_s30 = scalar_select %p596_p13, %s1443_s28, 1 }
  0x24   : > { %s1232_s22 = sshll.u32 %s593_s18, 3  ;;  %s1881_s3 = sld [smem:[#allocation21_spill]] }
  0x25   : > { %s1257_s13 = sshll.u32 %s1616_s30, 5  ;;  %s1882_s5 = sld [smem:[#allocation22_spill]] }
  0x26   : > { %s1659_s18 = scalar_lea.vmem %s1839_s9, %s1257_s13  ;;  %s631_s19 = scalar_lea.vmem %s1840_s10, %s1616_s30 }
  0x27   : > { %s595_s16 = scalar_lea.vmem %s1879_s0, %s1232_s22  ;;  %s639_s25 = scalar_lea.vmem %s1842_s12, %s1616_s30 }
  0x28   : > { %s591_s26 = scalar_lea.vmem [#allocation3], %s1611_s17  ;;  %s1883_s20 = sld [smem:[#allocation9_spill]] }
  0x2a   : > { %s1633_s29 = scalar_lea.vmem %s1881_s3, %s1257_s13  ;;  %s623_s3 = scalar_lea.vmem %s1838_s8, %s1616_s30 }
  0x2b   : > { %s1642_s0 = scalar_lea.vmem %s1882_s5, %s1257_s13  ;;  %s1260_s5 = sshll.u32 %s1616_s30, 7 }
  0x2c   : > { %s1673_s27 = scalar_lea.vmem %s1841_s11, %s1260_s5 }
  0x2e   : > { %p1241_p0 = scmp.ne.s32.totalorder %s1883_s20, 0 }
  0x30   : > { %643 = sbr.rel (%p1241_p0) target bundleno = 55 (0x37), region = 76 }
  0x35   : > { %v644_v0 = vld [vmem:[%s595_s16] sm:$0xff]  ;;  %vm645_vm0 = vcmask 261120  }
  0x36   : > { %646 = vst.msk [vmem:[#allocation2] sm:$0xff] %vm645_vm0, %v644_v0 }
  0x37 PF: > { %vm650_vm1 = vcmask 261120   ;;  %v1461_v3 = vmov 32.0   ;;  %v691_v15 = vld [vmem:[%s1633_s29 + $0x18] sm:$0xff]  ;;  %v690_v16 = vld [vmem:[%s1633_s29 + $0x10] sm:$0xff]  ;;  %v689_v17 = vld [vmem:[%s1633_s29 + $0x8] sm:$0xff]  ;;  %s1884_s13 = scalar_lea.vmem %s1831_s1, %s1616_s30  ;;  %s1885_s28 = sld [smem:[#allocation20_spill]] }
  0x38   : > { %1347 = vrcp.f32 %v1461_v3  ;;  %711 = vmatpush.msra.mxu2 %v691_v15  ;;  %v688_v18 = vld [vmem:[%s1633_s29] sm:$0xff]  ;;  %s1887_s24 = scalar_lea.vmem %s1834_s4, %s1616_s30  ;;  %s1462_s15 = smov 96   ;;  %vm723_vm6 = vcmask 130048   ;;  %vm749_vm7 = vcmask 64512   ;;  %v860_v63 = vld [vmem:[%s1642_s0 + $0x18] sm:$0xff]  ;;  %v859_v0 = vld [vmem:[%s1642_s0 + $0x10] sm:$0xff] }
  0x39   : > { %v1339_v28 = vld [vmem:[%s1884_s13] ss:$0 sm:$0xff]  ;;  %s1463_s21 = smov 112   ;;  %s1464_s20 = smov 80  }
  0x3a   : > { %712 = vmatpush.msra.mxu2 %v690_v16  ;;  %v1341_v34 = vld [vmem:[%s1887_s24] ss:$0 sm:$0xff]  ;;  %s1465_s2 = smov 48   ;;  %s1466_s5 = smov 64  }
  0x3b   : > { %s1467_s13 = smov 16  }
  0x3c   : > { %713 = vmatpush.msra.mxu2 %v689_v17 }
  0x3d   : > { %v1677_v1 = vld [vmem:[#allocation2] sm:$0xff]  ;;  %s1886_s23 = scalar_lea.vmem %s1885_s28, %s1616_s30  ;;  %s1888_s28 = scalar_lea.vmem %s1836_s6, %s1616_s30 }
  0x3e   : > { %v651_v2 = vsel %vm650_vm1, %v1677_v1, 0.0  ;;  %v1348_v4 = vpop.eup %1347  ;;  %714 = vmatpush.msra.mxu2 %v688_v18  ;;  %v1340_v31 = vld [vmem:[%s1886_s23] ss:$0 sm:$0xff]  ;;  %s1889_s23 = scalar_lea.vmem %s1837_s7, %s1616_s30 }
  0x3f   : > { %652 = vadd.xlane.f32.xlu0 %v651_v2  ;;  %v655_v5 = vmul.f32 32.0, %v1348_v4  ;;  %vm659_vm2 = vweird.f32 %v1348_v4  ;;  %v858_v2 = vld [vmem:[%s1642_s0 + $0x8] sm:$0xff] }
  0x41   : > { %v656_v6 = vsub.f32 1.0, %v655_v5  ;;  %v857_v5 = vld [vmem:[%s1642_s0] sm:$0xff] }
  0x43   : > { %v657_v7 = vmul.f32 %v1348_v4, %v656_v6 }
  0x45   : > { %v658_v8 = vadd.f32 %v1348_v4, %v657_v7 }
  0x47   : > { %v1681_v9 = vsel %vm659_vm2, %v1348_v4, %v658_v8  ;;  %v1342_v8 = vld [vmem:[%s1888_s28] ss:$0 sm:$0xff] }
  0xb2   : > { %v653_v10 = vpop.xlane.xlu0 %652 }
  0xb3   : > { %v661_v11 = vmul.f32 %v1681_v9, %v653_v10 }
  0xb5   : > { %v662_v12 = vsub.f32 %v1677_v1, %v661_v11 }
  0xb7   : > { %v663_v13 = vmul.f32 %v662_v12, %v662_v12 }
  0xb9   : > { %v664_v14 = vsel %vm650_vm1, %v663_v13, 0.0 }
  0xba   : > { %665 = vadd.xlane.f32.xlu0 %v664_v14 }
 0x12d   : > { %v666_v19 = vpop.xlane.xlu0 %665 }
 0x12e   : > { %v667_v20 = vmul.f32 %v666_v19, %v1681_v9  ;;  %v924_v19 = vld [vmem:[%s1659_s18 + $0x18] sm:$0xff] }
 0x130   : > { %v668_v21 = vadd.f32 1e-05, %v667_v20  ;;  %v923_v20 = vld [vmem:[%s1659_s18 + $0x10] sm:$0xff] }
 0x132   : > { %1349 = vrsqrt.f32 %v668_v21  ;;  %vm675_vm4 = vweird.f32 %v668_v21 }
 0x138   : > { %v1350_v22 = vpop.eup %1349 }
 0x139   : > { %v670_v23 = vmul.f32 %v1350_v22, %v668_v21  ;;  %vm676_vm3 = vweird.f32 %v1350_v22  ;;  %v922_v21 = vld [vmem:[%s1659_s18 + $0x8] sm:$0xff] }
 0x13a   : > { %vm677_vm5 = vmor %vm675_vm4, %vm676_vm3 }
 0x13b   : > { %v671_v24 = vmul.f32 %v1350_v22, %v670_v23 }
 0x13d   : > { %v672_v25 = vmul.f32 0.5, %v671_v24 }
 0x13f   : > { %v673_v26 = vsub.f32 1.5, %v672_v25 }
 0x141   : > { %v674_v27 = vmul.f32 %v1350_v22, %v673_v26 }
 0x143   : > { %v678_v29 = vsel %vm677_vm5, %v1350_v22, %v674_v27 }
 0x144   : > { %v679_v30 = vmul.f32 %v678_v29, %v662_v12 }
 0x146   : > { %v683_v32 = vmul.f32 %v1339_v28, %v679_v30 }
 0x148   : > { %v687_v33 = vadd.f32 %v1340_v31, %v683_v32 }
 0x14a   : > { %1242 = vmatmul.msk.f32.vlgmr.msra.gmra.mxu2 %vm650_vm1, %v687_v33  ;;  %v1344_v33 = vld [vmem:[%s623_s3] ss:$0 sm:$0xff] }
 0x1cd   : > { %v716_v35 = vpop.f32.mrf.mxu2 }
 0x1ce   : > { %v717_v36 = vadd.f32 %v1341_v34, %v716_v35 }
 0x1d0   : > { %721 = vrot.lane.b32.xlu1 %v717_v36, %s1462_s15  ;;  %v719_v37 = vmul.f32 0.25, %v717_v36  ;;  %s1890_s15 = sld [smem:[#allocation9_spill]] }
 0x1d2   : > { %787 = vrot.lane.b32.xlu2 %v719_v37, %s1463_s21 }
 0x1d6   : > { %p1252_p1 = scmp.ne.s32.totalorder %s1890_s15, 1 }
 0x1d8   : > { %789 = vrot.lane.b32.xlu1 %v717_v36, %s1464_s20 }
 0x22c   : > { %v788_v40 = vpop.permute.xlu2 %787 }
 0x242   : > { %v722_v38 = vpop.permute.xlu1 %721 }
 0x243   : > { %1243 = vmatpush.xpose.msk.msra.mxu1 %vm723_vm6, %v722_v38  ;;  %v986_v38 = vld [vmem:[%s1673_s27 + $0x68] sm:$0xff] }
 0x246   : > { %1244 = vmatmul.msk.f32.vlgmr.msra.gmra.mxu1 %vm723_vm6, %v719_v37  ;;  %v987_v37 = vld [vmem:[%s1673_s27 + $0x70] sm:$0xff] }
 0x247   : > { %880 = vmatpush.msrb.mxu1 %v860_v63 }
 0x249   : > { %881 = vmatpush.msrb.mxu1 %v859_v0 }
 0x24a   : > { %v790_v39 = vpop.permute.xlu1 %789 }
 0x24b   : > { %1246 = vmatpush.xpose.msk.msra.mxu3 %vm723_vm6, %v790_v39  ;;  %882 = vmatpush.msrb.mxu1 %v858_v2  ;;  %v985_v39 = vld [vmem:[%s1673_s27 + $0x60] sm:$0xff] }
 0x24d   : > { %883 = vmatpush.msrb.mxu1 %v857_v5 }
 0x24e   : > { %1247 = vmatmul.msk.f32.vlgmr.msra.gmra.mxu3 %vm723_vm6, %v788_v40  ;;  %v984_v40 = vld [vmem:[%s1673_s27 + $0x58] sm:$0xff] }
 0x24f   : > { %944 = vmatpush.msrb.mxu3 %v924_v19 }
 0x251   : > { %945 = vmatpush.msrb.mxu3 %v923_v20 }
 0x253   : > { %946 = vmatpush.msrb.mxu3 %v922_v21 }
 0x2c3   : > { %v746_v41 = vpop.f32.mrf.mxu1 }
 0x2c4   : > { %v750_v42 = vsel %vm749_vm7, %v746_v41, -inf }
 0x2c5   : > { %751 = vmax.xlane.f32.xlu2 %v750_v42  ;;  %v982_v42 = vld [vmem:[%s1673_s27 + $0x48] sm:$0xff] }
 0x2d1   : > { %v812_v43 = vpop.f32.mrf.mxu3 }
 0x2d2   : > { %v815_v44 = vsel %vm749_vm7, %v812_v43, -inf }
 0x2d3   : > { %816 = vmax.xlane.f32.xlu0 %v815_v44  ;;  %v980_v44 = vld [vmem:[%s1673_s27 + $0x38] sm:$0xff] }
 0x2dd   : > { %826 = vrot.lane.b32.xlu2 %v717_v36, %s1465_s2 }
 0x338   : > { %v752_v45 = vpop.xlane.xlu2 %751 }
 0x339   : > { %v753_v46 = vsub.f32 %v746_v41, %v752_v45  ;;  %v983_v41 = vld [vmem:[%s1673_s27 + $0x50] sm:$0xff] }
 0x33a   : > { %v979_v45 = vld [vmem:[%s1673_s27 + $0x30] sm:$0xff] }
 0x33b   : > { %v754_v47 = vmul.f32 1.442695, %v753_v46  ;;  %v978_v46 = vld [vmem:[%s1673_s27 + $0x28] sm:$0xff] }
 0x33d   : > { %1351 = vpow2.f32 %v754_v47  ;;  %v977_v47 = vld [vmem:[%s1673_s27 + $0x20] sm:$0xff] }
 0x340   : > { %v827_v60 = vpop.permute.xlu2 %826 }
 0x343   : > { %v1352_v48 = vpop.eup %1351 }
 0x344   : > { %v756_v49 = vsel %vm749_vm7, %v1352_v48, 0.0 }
 0x345   : > { %757 = vadd.xlane.f32.xlu1 %v756_v49  ;;  %v975_v49 = vld [vmem:[%s1673_s27 + $0x10] sm:$0xff] }
 0x346   : > { %v817_v50 = vpop.xlane.xlu0 %816 }
 0x347   : > { %v818_v51 = vsub.f32 %v812_v43, %v817_v50  ;;  %v981_v43 = vld [vmem:[%s1673_s27 + $0x40] sm:$0xff] }
 0x348   : > { %v1345_v50 = vld [vmem:[%s631_s19] ss:$0 sm:$0xff] }
 0x349   : > { %v819_v52 = vmul.f32 1.442695, %v818_v51  ;;  %v974_v51 = vld [vmem:[%s1673_s27 + $0x8] sm:$0xff] }
 0x34b   : > { %1353 = vpow2.f32 %v819_v52 }
 0x351   : > { %v1354_v53 = vpop.eup %1353 }
 0x352   : > { %v821_v54 = vsel %vm749_vm7, %v1354_v53, 0.0 }
 0x353   : > { %822 = vadd.xlane.f32.xlu0 %v821_v54 }
 0x367   : > { %761 = vrot.lane.b32.xlu0 %v717_v36, %s1466_s5  ;;  %v988_v36 = vld [vmem:[%s1673_s27 + $0x78] sm:$0xff] }
 0x368   : > { %993 = vmatpush.msra.mxu0 %v988_v36 }
 0x36a   : > { %994 = vmatpush.msra.mxu0 %v987_v37 }
 0x36c   : > { %995 = vmatpush.msra.mxu0 %v986_v38 }
 0x36e   : > { %996 = vmatpush.msra.mxu0 %v985_v39 }
 0x370   : > { %997 = vmatpush.msra.mxu0 %v984_v40 }
 0x372   : > { %998 = vmatpush.msra.mxu0 %v983_v41 }
 0x374   : > { %999 = vmatpush.msra.mxu0 %v982_v42 }
 0x376   : > { %1000 = vmatpush.msra.mxu0 %v981_v43 }
 0x378   : > { %1001 = vmatpush.msra.mxu0 %v980_v44 }
 0x37a   : > { %1002 = vmatpush.msra.mxu0 %v979_v45 }
 0x37c   : > { %1003 = vmatpush.msra.mxu0 %v978_v46 }
 0x37e   : > { %1004 = vmatpush.msra.mxu0 %v977_v47 }
 0x3b8   : > { %v758_v55 = vpop.xlane.xlu1 %757 }
 0x3b9   : > { %1355 = vrcp.f32 %v758_v55 }
 0x3bf   : > { %v1356_v57 = vpop.eup %1355 }
 0x3c0   : > { %v760_v59 = vmul.f32 %v1356_v57, %v1352_v48  ;;  %v976_v48 = vld [vmem:[%s1673_s27 + $0x18] sm:$0xff] }
 0x3c1   : > { %1005 = vmatpush.msra.mxu0 %v976_v48 }
 0x3c3   : > { %1006 = vmatpush.msra.mxu0 %v975_v49 }
 0x3c5   : > { %1007 = vmatpush.msra.mxu0 %v974_v51 }
 0x3c6   : > { %v823_v56 = vpop.xlane.xlu0 %822 }
 0x3c7   : > { %1357 = vrcp.f32 %v823_v56 }
 0x3cd   : > { %v1358_v61 = vpop.eup %1357 }
 0x3ce   : > { %v825_v62 = vmul.f32 %v1358_v61, %v1354_v53  ;;  %v973_v53 = vld [vmem:[%s1673_s27] sm:$0xff] }
 0x3cf   : > { %1008 = vmatpush.msra.mxu0 %v973_v53 }
 0x3d9   : > { %v762_v58 = vpop.permute.xlu0 %761 }
 0x3da   : > { %782 = vmatpush.msrb.mxu2 %v762_v58 }
 0x3db   : > { %1245 = vmatmul.msk.f32.vlgmr.msrb.gmra.mxu2 %vm749_vm7, %v760_v59 }
 0x3dc   : > { %847 = vmatpush.msra.mxu2 %v827_v60 }
 0x3e3   : > { %1248 = vmatmul.msk.f32.vlgmr.msra.gmra.mxu2 %vm749_vm7, %v825_v62 }
 0x45e   : > { %v784_v3 = vpop.f32.mrf.mxu2 }
 0x466   : > { %v849_v4 = vpop.f32.mrf.mxu2 }
 0x467   : > { %853 = vrot.lane.b32.xlu0 %v849_v4, %s1467_s13 }
 0x4d9   : > { %v854_v6 = vpop.permute.xlu0 %853 }
 0x4da   : > { %v856_v7 = vsel %vm723_vm6, %v784_v3, %v854_v6 }
 0x4db   : > { %1249 = vmatmul.msk.f32.vlgmr.msrb.gmra.mxu1 %vm650_vm1, %v856_v7  ;;  %v1346_v7 = vld [vmem:[%s639_s25] ss:$0 sm:$0xff] }
 0x558   : > { %v885_v10 = vpop.f32.mrf.mxu1 }
 0x559   : > { %v886_v11 = vadd.f32 %v1342_v8, %v885_v10 }
 0x55b   : > { %v1729_v12 = vadd.f32 %v886_v11, %v1677_v1  ;;  %v921_v1 = vld [vmem:[%s1659_s18] sm:$0xff] }
 0x55c   : > { %947 = vmatpush.msrb.mxu3 %v921_v1 }
 0x55d   : > { %v891_v13 = vsel %vm650_vm1, %v1729_v12, 0.0 }
 0x55e   : > { %892 = vadd.xlane.f32.xlu1 %v891_v13 }
 0x5d1   : > { %v893_v14 = vpop.xlane.xlu1 %892 }
 0x5d2   : > { %v894_v15 = vmul.f32 %v893_v14, %v1681_v9 }
 0x5d4   : > { %v895_v16 = vsub.f32 %v1729_v12, %v894_v15 }
 0x5d6   : > { %v896_v17 = vmul.f32 %v895_v16, %v895_v16 }
 0x5d8   : > { %v897_v18 = vsel %vm650_vm1, %v896_v17, 0.0 }
 0x5d9   : > { %898 = vadd.xlane.f32.xlu0 %v897_v18 }
 0x64c   : > { %v899_v22 = vpop.xlane.xlu0 %898 }
 0x64d   : > { %v900_v23 = vmul.f32 %v899_v22, %v1681_v9  ;;  %v1343_v9 = vld [vmem:[%s1889_s23] ss:$0 sm:$0xff] }
 0x64f   : > { %v901_v24 = vadd.f32 1e-05, %v900_v23 }
 0x651   : > { %1359 = vrsqrt.f32 %v901_v24  ;;  %vm908_vm9 = vweird.f32 %v901_v24 }
 0x657   : > { %v1360_v25 = vpop.eup %1359 }
 0x658   : > { %v903_v26 = vmul.f32 %v1360_v25, %v901_v24  ;;  %vm909_vm8 = vweird.f32 %v1360_v25 }
 0x659   : > { %vm910_vm10 = vmor %vm908_vm9, %vm909_vm8 }
 0x65a   : > { %v904_v27 = vmul.f32 %v1360_v25, %v903_v26 }
 0x65c   : > { %v905_v28 = vmul.f32 0.5, %v904_v27 }
 0x65e   : > { %v906_v29 = vsub.f32 1.5, %v905_v28 }
 0x660   : > { %v907_v30 = vmul.f32 %v1360_v25, %v906_v29 }
 0x662   : > { %v911_v31 = vsel %vm910_vm10, %v1360_v25, %v907_v30 }
 0x663   : > { %v912_v32 = vmul.f32 %v911_v31, %v895_v16 }
 0x665   : > { %v916_v34 = vmul.f32 %v1343_v9, %v912_v32 }
 0x667   : > { %v920_v35 = vadd.f32 %v1344_v33, %v916_v34 }
 0x669   : > { %1250 = vmatmul.msk.f32.vlgmr.msrb.gmra.mxu3 %vm650_vm1, %v920_v35 }
 0x6ec   : > { %v949_v52 = vpop.f32.mrf.mxu3 }
 0x6ed   : > { %v950_v54 = vadd.f32 %v1345_v50, %v949_v52 }
 0x6ef   : > { %v1251_v55 = vmul.f32 -1.702, %v950_v54 }
 0x6f1   : > { %v954_v56 = vmul.f32 1.442695, %v1251_v55 }
 0x6f3   : > { %1361 = vpow2.f32 %v954_v56 }
 0x6f9   : > { %v1362_v57 = vpop.eup %1361 }
 0x6fa   : > { %v956_v58 = vadd.f32 1.0, %v1362_v57 }
 0x6fc   : > { %1363 = vrcp.f32 %v956_v58  ;;  %v968_v62 = vand.u32 2147483648, %v956_v58  ;;  %v966_v0 = vand.u32 2147483647, %v956_v58  ;;  %vm962_vm12 = vweird.f32 %v956_v58 }
 0x6fe   : > { %v969_v3 = vor.u32 1.1754944e-38, %v968_v62  ;;  %vm967_vm14 = vcmp.eq.f32.partialorder %v966_v0, 8.507059e+37 }
 0x702   : > { %v1364_v59 = vpop.eup %1363 }
 0x703   : > { %v958_v60 = vmul.f32 %v1364_v59, %v956_v58  ;;  %vm963_vm11 = vweird.f32 %v1364_v59 }
 0x704   : > { %vm964_vm13 = vmor %vm962_vm12, %vm963_vm11 }
 0x705   : > { %v959_v61 = vsub.f32 1.0, %v958_v60 }
 0x707   : > { %v960_v63 = vmul.f32 %v1364_v59, %v959_v61 }
 0x709   : > { %v961_v2 = vadd.f32 %v1364_v59, %v960_v63 }
 0x70b   : > { %v965_v4 = vsel %vm964_vm13, %v1364_v59, %v961_v2 }
 0x70c   : > { %v970_v5 = vsel %vm967_vm14, %v969_v3, %v965_v4 }
 0x70d   : > { %v972_v6 = vmul.f32 %v970_v5, %v950_v54 }
 0x70f   : > { %1009 = vmatmul.f32.vlgmr.msra.gmra.mxu0 %v972_v6 }
 0x78c   : > { %v1010_v8 = vpop.f32.mrf.mxu0 }
 0x78d   : > { %v1011_v10 = vadd.f32 %v1346_v7, %v1010_v8  ;;  %1018 = sbr.rel (%p1252_p1) target bundleno = 1939 (0x793), region = 80 }
 0x78f   : > { %v1013_v11 = vadd.f32 %v1011_v10, %v1729_v12 }
 0x791   : > { %1014 = vst.msk [vmem:[#allocation2] sm:$0xff] %vm650_vm1, %v1013_v11 }
 0x792   : > { %1019 = vst.msk [vmem:[%s591_s26] sm:$0xff] %vm650_vm1, %v1013_v11 }
 0x793 PF: > { %s1891_s21 = sld [smem:[#allocation10_spill]]  ;;  %s1033_s16 = sshll.u32 %s591_s26, 4  ;;  %s1034_s16 = int_to_ptr.vmem [resolvable:$true] %s1033_s16 }
 0x794   : > { %s1892_s20 = sld [smem:[#allocation7_spill]] }
 0x795   : > { %s1894_s13 = sld [smem:[#allocation23_spill]] }
 0x799   : > { %s1254_s30 = sshll.u32 %s1891_s21, 3 }
 0x79a   : > { %s1895_s0 = sand.u32 1, %s1892_s20  }
 0x79b   : > { %s1031_s29 = scalar_lea.hbm %s1894_s13, %s1254_s30  ;;  %s1021_s18 = scalar_lea.sflag [#allocation4], %s1895_s0 }
 0x79c   : > { %s1035_s28 = sshll.u32 %s1031_s29, 4  ;;  %s1385_s24 = scalar_lea.hbm %s1894_s13, 16  ;;  %s1036_s28 = int_to_ptr.hbm [resolvable:$true] %s1035_s28 }
 0x79d   : > { %s1379_s23 = sshra.s32 %s1036_s28, 4  ;;  %s1380_s23 = int_to_ptr.hbm [resolvable:$true] %s1379_s23 }
 0x79e   : > { %s1381_s22 = scalar_lea.hbm %s1380_s23, 8  ;;  %p1386_p6 = scmp.lt.s32.totalorder %s1380_s23, %s1894_s13 }
 0x79f   : > { %p1382_p2 = scmp.ne.s32.totalorder %s1380_s23, %s1381_s22  ;;  %p1387_p7 = scmp.lt.s32.totalorder %s1385_s24, %s1381_s22 }
 0x7a1   : > { %p1383_p4 = pnand %p1382_p2, %p1587_p3  ;;  %p1388_p8 = por %p1387_p7, %p1386_p6 }
 0x7a3   : > { %p1384_p5 = pneg %p1383_p4 }
 0x7a5   : > { %p1389_p10 = pnand %p1388_p8, %p1384_p5 }
 0x7a7   : > { %1392 = shalt.err (!%p1389_p10)
}
 0x7a8   : > { %1261 = dma.vmem_to_hbm [thread:$0]  (%p1587_p3), %s1034_s16, 128, %s1036_s28, %s1021_s18  }
 0x7a9 PF: > { %s1896_s17 = sld [smem:[#allocation13_spill]] }
 0x7aa   : > { %s1897_s26 = sld [smem:[#allocation6_spill]] }
 0x7af   : > { %p1267_p11 = scmp.ge.s32.totalorder %s1896_s17, 2 }
 0x7b0   : > { %s1047_s21 = sand.u32 1, %s1897_s26  }
 0x7b1   : > { %p1264_p12 = pnand %p1267_p11, %p1597_p9  ;;  %s1048_s20 = scalar_lea.sflag [#allocation4], %s1047_s21 }
 0x7b3   : > { %p1265_p13 = pneg %p1264_p12 }
 0x7b5   : > { %1426 = dma.done.wait (%p1265_p13), %s1048_s20, 128  }
 0x7b6   : > { %1428 = vsyncadd (%p1265_p13), %s1048_s20, 4294967168  ;;  %s26_s15 = sadd.s32 1, %s1896_s17   ;;  %s1899_s25 = sld [smem:[#allocation7_spill]] }
 0x7b7   : > { %p23_p0 = scmp.ge.s32.totalorder %s26_s15, 6   ;;  %s1900_s26 = sld [smem:[#allocation8_spill]] }
 0x7b8   : > { %s1901_s27 = sld [smem:[#allocation18_spill]] }
 0x7b9   : > { %s1902_s28 = sld [smem:[#allocation11_spill]]  ;;  %25 = sbr.rel (!%p23_p0) target bundleno = 11 (0xb), region = 151 }
 0x7ba   : > { %s1903_s29 = sld [smem:[#allocation12_spill]] }
 0x7bb   : > { %s1904_s30 = sld [smem:[#allocation14_spill]] }
 0x7bc   : > { %s1905_s14 = sld [smem:[#allocation16_spill]] }
 0x7be   :  { %1054 = vsyncpa [#allocation4], 1 }
 0x7bf   :  { %1056 = vsyncpa [#allocation4 + $0x1], 1 }

</bundles_post_ra>
